<compile_context>
chip_gen: v6e
topology: v6e:2x2x1
jax: 0.10.0
libtpu: 0.0.40
codegen_flags: <defaults>
</compile_context>

<pallas_src>
import functools

import jax
import jax.numpy as jnp
import numpy as np
from jax import lax
from jax.experimental import pallas as pl
from jax.experimental.pallas import tpu as pltpu


def camera_contrast_kernel(feat_ref, proxy_ref, pc_ref, tc_ref, out_ref, *,
                           inv_temp, num_hards, actual_b):
    tb = feat_ref.shape[0]
    C = proxy_ref.shape[1]

    # ---- F.normalize(features, dim=1) in f32, with 1/temp folded into scale ----
    xf = feat_ref[...]                                            # (TB, D) f32
    sumsq = jnp.sum(xf * xf, axis=1, keepdims=True)
    # sqrt(max(sumsq, 1e-24)) == max(||x||, 1e-12)  -> same eps semantics
    scale = lax.rsqrt(jnp.maximum(sumsq, 1e-24)) * inv_temp       # (TB, 1)
    xn = (xf * scale).astype(jnp.bfloat16)                        # bf16 MXU lhs

    # ---- similarities (already divided by temp): (TB, D) @ (D, C) on MXU ----
    sim = jnp.dot(xn, proxy_ref[...],
                  preferred_element_type=jnp.float32)             # (TB, C) f32

    # ---- boolean masks ----
    t = tc_ref[:, 0:1]                     # (TB, 1) int32 targets
    cm = tc_ref[:, 1:2]                    # (TB, 1) int32 cams
    pid = pc_ref[0:1, :]                   # (1, C)  int32
    cid = pc_ref[1:2, :]                   # (1, C)  int32
    pos_b = jnp.logical_and(t == pid, cm != cid)                  # (TB, C)
    neg_b = t != pid                                              # (TB, C)

    # ---- hard negatives: top-k of (sim - 9999999*(1-neg)), first occurrence ----
    # Pack an order-preserving int32 key whose low ceil(log2(C)) bits hold
    # (C-1-col): keys are unique per row, so (a) a single max-reduce per
    # iteration extracts value+index at once and (b) "packed >= k-th extracted
    # key" reproduces exactly the same k columns / tie order afterwards.
    masked = jnp.where(neg_b, sim, sim + jnp.float32(-9999999.0))
    bits = pltpu.bitcast(masked, jnp.int32)
    vkey = jnp.where(bits < 0,
                     jnp.bitwise_xor(bits, jnp.int32(0x7FFFFFFF)),
                     bits)
    idx_bits = max((C - 1).bit_length(), 0)
    low_mask = (1 << idx_bits) - 1
    col = lax.broadcasted_iota(jnp.int32, (tb, C), 1)
    packed = jnp.bitwise_or(jnp.bitwise_and(vkey, jnp.int32(~low_mask)),
                            C - 1 - col)

    k_eff = min(int(num_hards), C)
    if k_eff > 0:
        int_min = jnp.int32(jnp.iinfo(jnp.int32).min)

        def body(_, carry):
            keys, _ = carry
            mx = jnp.max(keys, axis=1, keepdims=True)    # one XLU reduce / iter
            keys = jnp.where(keys == mx, int_min, keys)  # drop the extracted lane
            return keys, mx

        # moderate unroll: the (TB, C) body already amortizes loop overhead
        unroll = True if k_eff <= 4 else (2 if k_eff % 2 == 0 else 1)
        _, tau = lax.fori_loop(
            0, k_eff, body,
            (packed, jnp.full((tb, 1), jnp.iinfo(jnp.int32).max, jnp.int32)),
            unroll=unroll)
        hard_b = packed >= tau                           # exactly k_eff lanes/row
    else:
        hard_b = jnp.zeros((tb, C), jnp.bool_)

    # ---- weighted log-softmax over the concatenated (pos ++ hard-neg) multiset ----
    valid = jnp.logical_or(pos_b, hard_b)
    num_pos = jnp.sum(jnp.where(pos_b, 1.0, 0.0), axis=1, keepdims=True)
    m = jnp.max(jnp.where(valid, sim, jnp.float32(-3.0e38)),
                axis=1, keepdims=True)
    e = jnp.exp(sim - m)
    se = jnp.sum(jnp.where(pos_b, e, 0.0) + jnp.where(hard_b, e, 0.0),
                 axis=1, keepdims=True)                  # multiplicity-2 columns ok
    lse = m + jnp.log(se)
    pos_sum = jnp.sum(jnp.where(pos_b, sim, 0.0), axis=1, keepdims=True)

    # rows that are batch padding (ragged last tile) or have no positives -> 0
    row = lax.broadcasted_iota(jnp.int32, (tb, 1), 0) + pl.program_id(0) * tb
    row_ok = jnp.logical_and(num_pos > 0.0, row < actual_b)
    per_row = jnp.where(row_ok, lse - pos_sum / jnp.maximum(num_pos, 1.0), 0.0)

    tile_sum = jnp.sum(per_row, axis=0, keepdims=True)            # (1, 1)
    out_ref[...] = jnp.broadcast_to(tile_sum[None], (1, 8, 128))  # full-slab store


def _round_up(x, m):
    return ((x + m - 1) // m) * m


def _device_defaults():
    """Per-generation (tile, vmem cap, two-TensorCore) defaults; safe fallback."""
    kind = ""
    try:
        kind = jax.devices()[0].device_kind.lower()
    except Exception:
        pass
    if "v6" in kind:                       # v6e: 256-wide MXU, 128 MiB VMEM
        return 256, 96 << 20, False
    if "v5" in kind or "v4" in kind:       # v5e/v5p/v4: 128-wide MXU
        return 128, 96 << 20, False
    # v7x / unknown: 64 MiB physical VMEM per TensorCore, 2 TCs per chip
    return 128, 48 << 20, True


def camera_contrast(features, proxy, pids, cids, targets, cams, *,
                    temp=0.07, num_hards=50, block_b=None):
    B, D = features.shape
    C = proxy.shape[0]

    default_tb, vmem_cap, two_cores = _device_defaults()
    if block_b is None:
        block_b = default_tb

    # ---- batch tiling (sublane aligned); last tile may be ragged ----
    tb = _round_up(min(block_b, _round_up(B, 8)), 8)
    if two_cores and B > 8 and pl.cdiv(B, tb) < 2:
        tb = _round_up(pl.cdiv(B, 2), 8)   # give both v7x TensorCores a tile
    nb = pl.cdiv(B, tb)

    # ---- layout prep (glue only) ----
    feat = jnp.asarray(features, jnp.float32)             # no pad / no bf16 pre-pass
    proxy_t = jnp.asarray(proxy, jnp.bfloat16).T          # (D, C), grid-resident
    pc = jnp.stack([jnp.asarray(pids, jnp.int32),
                    jnp.asarray(cids, jnp.int32)], axis=0)            # (2, C)
    tc = jnp.stack([jnp.asarray(targets, jnp.int32),
                    jnp.asarray(cams, jnp.int32)], axis=1)            # (B, 2)

    # ---- scoped-VMEM budget from the actual tile sizes, capped below physical ----
    d_pad = _round_up(max(D, 128), 128)
    c_pad = _round_up(max(C, 128), 128)
    est = (2 * tb * d_pad * 4            # double-buffered f32 features tile
           + 2 * tb * 128 * 4            # double-buffered [targets, cams] tile
           + d_pad * c_pad * 2           # resident bf16 proxy.T (single-buffered)
           + 8 * c_pad * 4               # resident [pids; cids]
           + 14 * tb * c_pad * 4         # live (TB, C) intermediates
           + (4 << 20))                  # compiler-internal scratch slack
    vmem_limit = int(min(max(est, 32 << 20), vmem_cap))
    # TODO(synk): for very large C (proxy.T + (TB,C) intermediates > vmem_cap), add a
    # second "arbitrary" grid axis over C (online lse + per-C-tile top-k merge).

    kernel = functools.partial(camera_contrast_kernel,
                               inv_temp=1.0 / float(temp),
                               num_hards=int(num_hards),
                               actual_b=B)

    def _call(single_buffer_resident):
        res_kw = ({"pipeline_mode": pl.Buffered(1)}
                  if single_buffer_resident else {})
        return pl.pallas_call(
            kernel,
            out_shape=jax.ShapeDtypeStruct((nb, 8, 128), jnp.float32),
            grid=(nb,),
            in_specs=[
                pl.BlockSpec((tb, D), lambda i: (i, 0)),              # features (f32)
                pl.BlockSpec((D, C), lambda i: (0, 0), **res_kw),     # proxy.T (resident)
                pl.BlockSpec((2, C), lambda i: (0, 0), **res_kw),     # [pids; cids]
                pl.BlockSpec((tb, 2), lambda i: (i, 0)),              # [targets, cams]
            ],
            out_specs=pl.BlockSpec((1, 8, 128), lambda i: (i, 0, 0)),
            compiler_params=pltpu.CompilerParams(
                dimension_semantics=("parallel",),
                vmem_limit_bytes=vmem_limit),
        )(feat, proxy_t, pc, tc)

    try:
        partials = _call(True)     # single-buffer the grid-resident operands
    except Exception:
        partials = _call(False)    # fallback if pipeline_mode=Buffered(1) unsupported

    loss = jnp.sum(partials[:, 0, 0]) / B
    return loss.astype(jnp.float32).reshape(1)   # matches torch's shape-(1,) loss


def _reference(features, proxy, pids, cids, targets, cams, temp, num_hards):
    """Direct numpy port of the PyTorch forward (for correctness checking)."""
    f = features.astype(np.float64)
    fn = f / np.maximum(np.linalg.norm(f, axis=1, keepdims=True), 1e-12)
    sim = fn @ proxy.astype(np.float64).T / temp
    B, C = sim.shape
    k = min(num_hards, C)
    loss = 0.0
    for i in range(B):
        pos_mask = (targets[i] == pids) & (cams[i] != cids)
        neg_mask = (targets[i] != pids)
        pos_idx = np.nonzero(pos_mask)[0]
        if len(pos_idx) == 0:
            continue
        # mirror torch's f32 arithmetic for the hard-negative ranking
        masked = (sim[i].astype(np.float32)
                  + np.float32(-9999999.0) * (1.0 - neg_mask.astype(np.float32)))
        hard_idx = np.argsort(-masked, kind="stable")[:k]
        sel = np.concatenate([pos_idx, hard_idx])
        bs = sim[i, sel]
        bt = np.zeros(len(bs))
        bt[:len(pos_idx)] = 1.0 / len(pos_idx)
        mx = np.max(bs)
        logsm = bs - (mx + np.log(np.sum(np.exp(bs - mx))))
        loss += -(bt * logsm).sum()
    return np.float32(loss / B)


if __name__ == "__main__":
    key = jax.random.PRNGKey(0)
    k1, k2, k3, k4, k5, k6 = jax.random.split(key, 6)

    B, D, C = 20, 32, 16           # batch, feat_dim, num_cams
    num_hards, temp = 4, 0.07
    block_b = 8                    # small tile -> exercises multi-tile grid + ragged rows

    features = jax.random.normal(k1, (B, D), jnp.float32)
    # synthetic deterministic "buffers" (the module registers zeros; zeros would
    # make the loss degenerate, so initialize deterministically instead)
    proxy = jax.random.normal(k2, (C, D), jnp.float32)
    pids = jax.random.randint(k3, (C,), 0, 4)
    cids = jax.random.randint(k4, (C,), 0, 3)
    targets = jax.random.randint(k5, (B,), 0, 4)
    cams = jax.random.randint(k6, (B,), 0, 3)

    loss = camera_contrast(features, proxy, pids, cids, targets, cams,
                           temp=temp, num_hards=num_hards, block_b=block_b)
    loss = jax.block_until_ready(loss)

    ref = _reference(np.array(features), np.array(proxy), np.array(pids),
                     np.array(cids), np.array(targets), np.array(cams),
                     temp, num_hards)
    # bf16 MXU operands perturb the 1/temp-scaled similarities by O(1e-2) abs, so
    # the tolerance is looser than a pure-f32 path would need (structure errors
    # would still be O(1)+ and caught).
    assert np.allclose(np.array(loss)[0], ref, rtol=2e-2, atol=2e-2), (loss, ref)
    print("KERNEL_OK")
</pallas_src>

<mosaic_0001>
module attributes {stable_mosaic.version = 11 : i64} {
  func.func @camera_contrast_kernel(%arg0: i32, %arg1: memref<8x32xf32, #tpu.memory_space<vmem>>, %arg2: memref<32x16xbf16, #tpu.memory_space<vmem>>, %arg3: memref<2x16xi32, #tpu.memory_space<vmem>>, %arg4: memref<8x2xi32, #tpu.memory_space<vmem>>, %arg5: memref<1x8x128xf32, #tpu.memory_space<vmem>>) attributes {dimension_semantics = [#tpu.dimension_semantics<parallel>], iteration_bounds = array<i64: 3>, scalar_prefetch = 0 : i64, scratch_operands = 0 : i64, tpu.core_type = #tpu.core_type<tc>, window_params = [{transform_indices = @transform_0, window_bounds = array<i64: 8, 32>}, {pipeline_mode = #tpu.pipeline_mode<synchronous>, transform_indices = @transform_1, window_bounds = array<i64: 32, 16>}, {pipeline_mode = #tpu.pipeline_mode<synchronous>, transform_indices = @transform_2, window_bounds = array<i64: 2, 16>}, {transform_indices = @transform_3, window_bounds = array<i64: 8, 2>}, {transform_indices = @transform_4, window_bounds = array<i64: 1, 8, 128>}]} {
    %c0 = arith.constant 0 : index
    %c0_0 = arith.constant 0 : index
    %0 = vector.load %arg1[%c0, %c0_0] : memref<8x32xf32, #tpu.memory_space<vmem>>, vector<8x32xf32>
    %1 = arith.mulf %0, %0 : vector<8x32xf32>
    %cst = arith.constant dense<0.000000e+00> : vector<8xf32>
    %2 = vector.multi_reduction <add>, %1, %cst [1] : vector<8x32xf32> to vector<8xf32>
    %3 = vector.shape_cast %2 : vector<8xf32> to vector<8x1xf32>
    %cst_1 = arith.constant 1.000000e-24 : f32
    %4 = vector.broadcast %cst_1 : f32 to vector<8x1xf32>
    %5 = arith.maximumf %3, %4 : vector<8x1xf32>
    %6 = math.rsqrt %5 : vector<8x1xf32>
    %cst_2 = arith.constant 14.2857141 : f32
    %7 = vector.broadcast %cst_2 : f32 to vector<8x1xf32>
    %8 = arith.mulf %6, %7 : vector<8x1xf32>
    %9 = vector.broadcast %8 : vector<8x1xf32> to vector<8x32xf32>
    %10 = arith.mulf %0, %9 : vector<8x32xf32>
    %11 = arith.truncf %10 : vector<8x32xf32> to vector<8x32xbf16>
    %c0_3 = arith.constant 0 : index
    %c0_4 = arith.constant 0 : index
    %12 = vector.load %arg2[%c0_3, %c0_4] : memref<32x16xbf16, #tpu.memory_space<vmem>>, vector<32x16xbf16>
    %cst_5 = arith.constant dense<0.000000e+00> : vector<8x16xf32>
    %13 = tpu.matmul %11, %12, %cst_5 {dimension_numbers = #tpu.dot_dimension_numbers<[1], [0], [0], [1], [0, 0, 1, 1], [], []>} : vector<8x32xbf16>, vector<32x16xbf16>, vector<8x16xf32> -> vector<8x16xf32>
    %c0_6 = arith.constant 0 : index
    %c0_7 = arith.constant 0 : index
    %14 = vector.load %arg4[%c0_6, %c0_7] : memref<8x2xi32, #tpu.memory_space<vmem>>, vector<8x1xi32>
    %c0_8 = arith.constant 0 : index
    %c1 = arith.constant 1 : index
    %15 = vector.load %arg4[%c0_8, %c1] : memref<8x2xi32, #tpu.memory_space<vmem>>, vector<8x1xi32>
    %c0_9 = arith.constant 0 : index
    %c0_10 = arith.constant 0 : index
    %16 = vector.load %arg3[%c0_9, %c0_10] : memref<2x16xi32, #tpu.memory_space<vmem>>, vector<1x16xi32>
    %c1_11 = arith.constant 1 : index
    %c0_12 = arith.constant 0 : index
    %17 = vector.load %arg3[%c1_11, %c0_12] : memref<2x16xi32, #tpu.memory_space<vmem>>, vector<1x16xi32>
    %18 = vector.broadcast %14 : vector<8x1xi32> to vector<8x16xi32>
    %19 = vector.broadcast %16 : vector<1x16xi32> to vector<8x16xi32>
    %20 = arith.cmpi eq, %18, %19 : vector<8x16xi32>
    %21 = vector.broadcast %15 : vector<8x1xi32> to vector<8x16xi32>
    %22 = vector.broadcast %17 : vector<1x16xi32> to vector<8x16xi32>
    %23 = arith.cmpi ne, %21, %22 : vector<8x16xi32>
    %24 = arith.andi %20, %23 : vector<8x16xi1>
    %25 = vector.broadcast %14 : vector<8x1xi32> to vector<8x16xi32>
    %26 = vector.broadcast %16 : vector<1x16xi32> to vector<8x16xi32>
    %27 = arith.cmpi ne, %25, %26 : vector<8x16xi32>
    %cst_13 = arith.constant 0xCB18967F : f32
    %28 = vector.broadcast %cst_13 : f32 to vector<8x16xf32>
    %29 = arith.addf %13, %28 : vector<8x16xf32>
    %30 = arith.select %27, %13, %29 : vector<8x16xi1>, vector<8x16xf32>
    %31 = tpu.bitcast %30 : vector<8x16xf32> -> vector<8x16xi32>
    %c0_i32 = arith.constant 0 : i32
    %32 = vector.broadcast %c0_i32 : i32 to vector<8x16xi32>
    %33 = arith.cmpi slt, %31, %32 : vector<8x16xi32>
    %c2147483647_i32 = arith.constant 2147483647 : i32
    %34 = vector.broadcast %c2147483647_i32 : i32 to vector<8x16xi32>
    %35 = arith.xori %31, %34 : vector<8x16xi32>
    %36 = arith.select %33, %35, %31 : vector<8x16xi1>, vector<8x16xi32>
    %37 = tpu.iota {dimensions = array<i32: 1>} : vector<8x16xi32>
    %c-16_i32 = arith.constant -16 : i32
    %38 = vector.broadcast %c-16_i32 : i32 to vector<8x16xi32>
    %39 = arith.andi %36, %38 : vector<8x16xi32>
    %c15_i32 = arith.constant 15 : i32
    %40 = vector.broadcast %c15_i32 : i32 to vector<8x16xi32>
    %41 = arith.subi %40, %37 : vector<8x16xi32>
    %42 = arith.ori %39, %41 : vector<8x16xi32>
    %c2147483647_i32_14 = arith.constant 2147483647 : i32
    %43 = vector.broadcast %c2147483647_i32_14 : i32 to vector<8x1xi32>
    %c-2147483648_i32 = arith.constant -2147483648 : i32
    %c0_i32_15 = arith.constant 0 : i32
    %cst_16 = arith.constant dense<-2147483648> : vector<8xi32>
    %44 = vector.multi_reduction <maxsi>, %42, %cst_16 [1] : vector<8x16xi32> to vector<8xi32>
    %45 = vector.shape_cast %44 : vector<8xi32> to vector<8x1xi32>
    %46 = vector.broadcast %45 : vector<8x1xi32> to vector<8x16xi32>
    %47 = arith.cmpi eq, %42, %46 : vector<8x16xi32>
    %48 = vector.broadcast %c-2147483648_i32 : i32 to vector<8x16xi32>
    %49 = arith.select %47, %48, %42 : vector<8x16xi1>, vector<8x16xi32>
    %c1_i32 = arith.constant 1 : i32
    %cst_17 = arith.constant dense<-2147483648> : vector<8xi32>
    %50 = vector.multi_reduction <maxsi>, %49, %cst_17 [1] : vector<8x16xi32> to vector<8xi32>
    %51 = vector.shape_cast %50 : vector<8xi32> to vector<8x1xi32>
    %52 = vector.broadcast %51 : vector<8x1xi32> to vector<8x16xi32>
    %53 = arith.cmpi eq, %49, %52 : vector<8x16xi32>
    %54 = vector.broadcast %c-2147483648_i32 : i32 to vector<8x16xi32>
    %55 = arith.select %53, %54, %49 : vector<8x16xi1>, vector<8x16xi32>
    %c2_i32 = arith.constant 2 : i32
    %cst_18 = arith.constant dense<-2147483648> : vector<8xi32>
    %56 = vector.multi_reduction <maxsi>, %55, %cst_18 [1] : vector<8x16xi32> to vector<8xi32>
    %57 = vector.shape_cast %56 : vector<8xi32> to vector<8x1xi32>
    %58 = vector.broadcast %57 : vector<8x1xi32> to vector<8x16xi32>
    %59 = arith.cmpi eq, %55, %58 : vector<8x16xi32>
    %60 = vector.broadcast %c-2147483648_i32 : i32 to vector<8x16xi32>
    %61 = arith.select %59, %60, %55 : vector<8x16xi1>, vector<8x16xi32>
    %c3_i32 = arith.constant 3 : i32
    %cst_19 = arith.constant dense<-2147483648> : vector<8xi32>
    %62 = vector.multi_reduction <maxsi>, %61, %cst_19 [1] : vector<8x16xi32> to vector<8xi32>
    %63 = vector.shape_cast %62 : vector<8xi32> to vector<8x1xi32>
    %64 = vector.broadcast %63 : vector<8x1xi32> to vector<8x16xi32>
    %65 = arith.cmpi eq, %61, %64 : vector<8x16xi32>
    %66 = vector.broadcast %c-2147483648_i32 : i32 to vector<8x16xi32>
    %67 = arith.select %65, %66, %61 : vector<8x16xi1>, vector<8x16xi32>
    %68 = vector.broadcast %63 : vector<8x1xi32> to vector<8x16xi32>
    %69 = arith.cmpi sge, %42, %68 : vector<8x16xi32>
    %70 = arith.ori %24, %69 : vector<8x16xi1>
    %cst_20 = arith.constant 1.000000e+00 : f32
    %cst_21 = arith.constant 0.000000e+00 : f32
    %71 = vector.broadcast %cst_20 : f32 to vector<8x16xf32>
    %72 = vector.broadcast %cst_21 : f32 to vector<8x16xf32>
    %73 = arith.select %24, %71, %72 : vector<8x16xi1>, vector<8x16xf32>
    %cst_22 = arith.constant dense<0.000000e+00> : vector<8xf32>
    %74 = vector.multi_reduction <add>, %73, %cst_22 [1] : vector<8x16xf32> to vector<8xf32>
    %75 = vector.shape_cast %74 : vector<8xf32> to vector<8x1xf32>
    %cst_23 = arith.constant -3.000000e+38 : f32
    %76 = vector.broadcast %cst_23 : f32 to vector<8x16xf32>
    %77 = arith.select %70, %13, %76 : vector<8x16xi1>, vector<8x16xf32>
    %cst_24 = arith.constant dense<0xFF800000> : vector<8xf32>
    %78 = vector.multi_reduction <maximumf>, %77, %cst_24 [1] : vector<8x16xf32> to vector<8xf32>
    %79 = vector.shape_cast %78 : vector<8xf32> to vector<8x1xf32>
    %80 = vector.broadcast %79 : vector<8x1xf32> to vector<8x16xf32>
    %81 = arith.subf %13, %80 : vector<8x16xf32>
    %82 = math.exp %81 : vector<8x16xf32>
    %cst_25 = arith.constant 0.000000e+00 : f32
    %83 = vector.broadcast %cst_25 : f32 to vector<8x16xf32>
    %84 = arith.select %24, %82, %83 : vector<8x16xi1>, vector<8x16xf32>
    %cst_26 = arith.constant 0.000000e+00 : f32
    %85 = vector.broadcast %cst_26 : f32 to vector<8x16xf32>
    %86 = arith.select %69, %82, %85 : vector<8x16xi1>, vector<8x16xf32>
    %87 = arith.addf %84, %86 : vector<8x16xf32>
    %cst_27 = arith.constant dense<0.000000e+00> : vector<8xf32>
    %88 = vector.multi_reduction <add>, %87, %cst_27 [1] : vector<8x16xf32> to vector<8xf32>
    %89 = vector.shape_cast %88 : vector<8xf32> to vector<8x1xf32>
    %90 = math.log %89 : vector<8x1xf32>
    %91 = arith.addf %79, %90 : vector<8x1xf32>
    %cst_28 = arith.constant 0.000000e+00 : f32
    %92 = vector.broadcast %cst_28 : f32 to vector<8x16xf32>
    %93 = arith.select %24, %13, %92 : vector<8x16xi1>, vector<8x16xf32>
    %cst_29 = arith.constant dense<0.000000e+00> : vector<8xf32>
    %94 = vector.multi_reduction <add>, %93, %cst_29 [1] : vector<8x16xf32> to vector<8xf32>
    %95 = vector.shape_cast %94 : vector<8xf32> to vector<8x1xf32>
    %96 = tpu.iota {dimensions = array<i32: 0>} : vector<8x1xi32>
    %c8_i32 = arith.constant 8 : i32
    %97 = arith.muli %arg0, %c8_i32 : i32
    %98 = vector.broadcast %97 : i32 to vector<8x1xi32>
    %99 = arith.addi %96, %98 : vector<8x1xi32>
    %cst_30 = arith.constant 0.000000e+00 : f32
    %100 = vector.broadcast %cst_30 : f32 to vector<8x1xf32>
    %101 = arith.cmpf ogt, %75, %100 : vector<8x1xf32>
    %c20_i32 = arith.constant 20 : i32
    %102 = vector.broadcast %c20_i32 : i32 to vector<8x1xi32>
    %103 = arith.cmpi slt, %99, %102 : vector<8x1xi32>
    %104 = arith.andi %101, %103 : vector<8x1xi1>
    %cst_31 = arith.constant 1.000000e+00 : f32
    %105 = vector.broadcast %cst_31 : f32 to vector<8x1xf32>
    %106 = arith.maximumf %75, %105 : vector<8x1xf32>
    %107 = arith.divf %95, %106 : vector<8x1xf32>
    %108 = arith.subf %91, %107 : vector<8x1xf32>
    %cst_32 = arith.constant 0.000000e+00 : f32
    %109 = vector.broadcast %cst_32 : f32 to vector<8x1xf32>
    %110 = arith.select %104, %108, %109 : vector<8x1xi1>, vector<8x1xf32>
    %cst_33 = arith.constant dense<0.000000e+00> : vector<1xf32>
    %111 = vector.multi_reduction <add>, %110, %cst_33 [0] : vector<8x1xf32> to vector<1xf32>
    %112 = vector.shape_cast %111 : vector<1xf32> to vector<1x1xf32>
    %113 = vector.shape_cast %112 : vector<1x1xf32> to vector<1x1x1xf32>
    %114 = vector.shape_cast %113 : vector<1x1x1xf32> to vector<1x1x1xf32>
    %115 = vector.broadcast %114 : vector<1x1x1xf32> to vector<1x8x128xf32>
    %c0_34 = arith.constant 0 : index
    %c0_35 = arith.constant 0 : index
    %c0_36 = arith.constant 0 : index
    %116 = vector.load %arg5[%c0_34, %c0_35, %c0_36] : memref<1x8x128xf32, #tpu.memory_space<vmem>>, vector<1x8x128xf32>
    tpu.vector_store %arg5[%c0_34, %c0_35, %c0_36], %115 {strides = array<i32>} : memref<1x8x128xf32, #tpu.memory_space<vmem>>, vector<1x8x128xf32>,
    return
  }
  func.func @transform_0(%arg0: i32) -> (i32, i32) {
    %c0_i32 = arith.constant 0 : i32
    %c0_i32_0 = arith.constant 0 : i32
    return %arg0, %c0_i32 : i32, i32
  }
  func.func @transform_1(%arg0: i32) -> (i32, i32) {
    %c0_i32 = arith.constant 0 : i32
    %c0_i32_0 = arith.constant 0 : i32
    %c0_i32_1 = arith.constant 0 : i32
    return %c0_i32, %c0_i32_0 : i32, i32
  }
  func.func @transform_2(%arg0: i32) -> (i32, i32) {
    %c0_i32 = arith.constant 0 : i32
    %c0_i32_0 = arith.constant 0 : i32
    %c0_i32_1 = arith.constant 0 : i32
    return %c0_i32, %c0_i32_0 : i32, i32
  }
  func.func @transform_3(%arg0: i32) -> (i32, i32) {
    %c0_i32 = arith.constant 0 : i32
    %c0_i32_0 = arith.constant 0 : i32
    return %arg0, %c0_i32 : i32, i32
  }
  func.func @transform_4(%arg0: i32) -> (i32, i32, i32) {
    %c0_i32 = arith.constant 0 : i32
    %c0_i32_0 = arith.constant 0 : i32
    %c0_i32_1 = arith.constant 0 : i32
    return %arg0, %c0_i32, %c0_i32_0 : i32, i32, i32
  }
}

module attributes {stable_mosaic.version = 11 : i64} {
  func.func @camera_contrast_kernel(%arg0: i32, %arg1: memref<8x32xf32, #tpu.memory_space<vmem>>, %arg2: memref<32x16xbf16, #tpu.memory_space<vmem>>, %arg3: memref<2x16xi32, #tpu.memory_space<vmem>>, %arg4: memref<8x2xi32, #tpu.memory_space<vmem>>, %arg5: memref<1x8x128xf32, #tpu.memory_space<vmem>>) attributes {dimension_semantics = [#tpu.dimension_semantics<parallel>], iteration_bounds = array<i64: 3>, scalar_prefetch = 0 : i64, scratch_operands = 0 : i64, tpu.core_type = #tpu.core_type<tc>, window_params = [{transform_indices = @transform_0, window_bounds = array<i64: 8, 32>}, {pipeline_mode = #tpu.pipeline_mode<synchronous>, transform_indices = @transform_1, window_bounds = array<i64: 32, 16>}, {pipeline_mode = #tpu.pipeline_mode<synchronous>, transform_indices = @transform_2, window_bounds = array<i64: 2, 16>}, {transform_indices = @transform_3, window_bounds = array<i64: 8, 2>}, {transform_indices = @transform_4, window_bounds = array<i64: 1, 8, 128>}]} {
    %c0 = arith.constant 0 : index
    %c0_0 = arith.constant 0 : index
    %0 = vector.load %arg1[%c0, %c0_0] : memref<8x32xf32, #tpu.memory_space<vmem>>, vector<8x32xf32>
    %1 = arith.mulf %0, %0 : vector<8x32xf32>
    %cst = arith.constant dense<0.000000e+00> : vector<8xf32>
    %2 = vector.multi_reduction <add>, %1, %cst [1] : vector<8x32xf32> to vector<8xf32>
    %3 = vector.shape_cast %2 : vector<8xf32> to vector<8x1xf32>
    %cst_1 = arith.constant 1.000000e-24 : f32
    %4 = vector.broadcast %cst_1 : f32 to vector<8x1xf32>
    %5 = arith.maximumf %3, %4 : vector<8x1xf32>
    %6 = math.rsqrt %5 : vector<8x1xf32>
    %cst_2 = arith.constant 14.2857141 : f32
    %7 = vector.broadcast %cst_2 : f32 to vector<8x1xf32>
    %8 = arith.mulf %6, %7 : vector<8x1xf32>
    %9 = vector.broadcast %8 : vector<8x1xf32> to vector<8x32xf32>
    %10 = arith.mulf %0, %9 : vector<8x32xf32>
    %11 = arith.truncf %10 : vector<8x32xf32> to vector<8x32xbf16>
    %c0_3 = arith.constant 0 : index
    %c0_4 = arith.constant 0 : index
    %12 = vector.load %arg2[%c0_3, %c0_4] : memref<32x16xbf16, #tpu.memory_space<vmem>>, vector<32x16xbf16>
    %cst_5 = arith.constant dense<0.000000e+00> : vector<8x16xf32>
    %13 = tpu.matmul %11, %12, %cst_5 {dimension_numbers = #tpu.dot_dimension_numbers<[1], [0], [0], [1], [0, 0, 1, 1], [], []>} : vector<8x32xbf16>, vector<32x16xbf16>, vector<8x16xf32> -> vector<8x16xf32>
    %c0_6 = arith.constant 0 : index
    %c0_7 = arith.constant 0 : index
    %14 = vector.load %arg4[%c0_6, %c0_7] : memref<8x2xi32, #tpu.memory_space<vmem>>, vector<8x1xi32>
    %c0_8 = arith.constant 0 : index
    %c1 = arith.constant 1 : index
    %15 = vector.load %arg4[%c0_8, %c1] : memref<8x2xi32, #tpu.memory_space<vmem>>, vector<8x1xi32>
    %c0_9 = arith.constant 0 : index
    %c0_10 = arith.constant 0 : index
    %16 = vector.load %arg3[%c0_9, %c0_10] : memref<2x16xi32, #tpu.memory_space<vmem>>, vector<1x16xi32>
    %c1_11 = arith.constant 1 : index
    %c0_12 = arith.constant 0 : index
    %17 = vector.load %arg3[%c1_11, %c0_12] : memref<2x16xi32, #tpu.memory_space<vmem>>, vector<1x16xi32>
    %18 = vector.broadcast %14 : vector<8x1xi32> to vector<8x16xi32>
    %19 = vector.broadcast %16 : vector<1x16xi32> to vector<8x16xi32>
    %20 = arith.cmpi eq, %18, %19 : vector<8x16xi32>
    %21 = vector.broadcast %15 : vector<8x1xi32> to vector<8x16xi32>
    %22 = vector.broadcast %17 : vector<1x16xi32> to vector<8x16xi32>
    %23 = arith.cmpi ne, %21, %22 : vector<8x16xi32>
    %24 = arith.andi %20, %23 : vector<8x16xi1>
    %25 = vector.broadcast %14 : vector<8x1xi32> to vector<8x16xi32>
    %26 = vector.broadcast %16 : vector<1x16xi32> to vector<8x16xi32>
    %27 = arith.cmpi ne, %25, %26 : vector<8x16xi32>
    %cst_13 = arith.constant 0xCB18967F : f32
    %28 = vector.broadcast %cst_13 : f32 to vector<8x16xf32>
    %29 = arith.addf %13, %28 : vector<8x16xf32>
    %30 = arith.select %27, %13, %29 : vector<8x16xi1>, vector<8x16xf32>
    %31 = tpu.bitcast %30 : vector<8x16xf32> -> vector<8x16xi32>
    %c0_i32 = arith.constant 0 : i32
    %32 = vector.broadcast %c0_i32 : i32 to vector<8x16xi32>
    %33 = arith.cmpi slt, %31, %32 : vector<8x16xi32>
    %c2147483647_i32 = arith.constant 2147483647 : i32
    %34 = vector.broadcast %c2147483647_i32 : i32 to vector<8x16xi32>
    %35 = arith.xori %31, %34 : vector<8x16xi32>
    %36 = arith.select %33, %35, %31 : vector<8x16xi1>, vector<8x16xi32>
    %37 = tpu.iota {dimensions = array<i32: 1>} : vector<8x16xi32>
    %c-16_i32 = arith.constant -16 : i32
    %38 = vector.broadcast %c-16_i32 : i32 to vector<8x16xi32>
    %39 = arith.andi %36, %38 : vector<8x16xi32>
    %c15_i32 = arith.constant 15 : i32
    %40 = vector.broadcast %c15_i32 : i32 to vector<8x16xi32>
    %41 = arith.subi %40, %37 : vector<8x16xi32>
    %42 = arith.ori %39, %41 : vector<8x16xi32>
    %c2147483647_i32_14 = arith.constant 2147483647 : i32
    %43 = vector.broadcast %c2147483647_i32_14 : i32 to vector<8x1xi32>
    %c-2147483648_i32 = arith.constant -2147483648 : i32
    %c0_i32_15 = arith.constant 0 : i32
    %cst_16 = arith.constant dense<-2147483648> : vector<8xi32>
    %44 = vector.multi_reduction <maxsi>, %42, %cst_16 [1] : vector<8x16xi32> to vector<8xi32>
    %45 = vector.shape_cast %44 : vector<8xi32> to vector<8x1xi32>
    %46 = vector.broadcast %45 : vector<8x1xi32> to vector<8x16xi32>
    %47 = arith.cmpi eq, %42, %46 : vector<8x16xi32>
    %48 = vector.broadcast %c-2147483648_i32 : i32 to vector<8x16xi32>
    %49 = arith.select %47, %48, %42 : vector<8x16xi1>, vector<8x16xi32>
    %c1_i32 = arith.constant 1 : i32
    %cst_17 = arith.constant dense<-2147483648> : vector<8xi32>
    %50 = vector.multi_reduction <maxsi>, %49, %cst_17 [1] : vector<8x16xi32> to vector<8xi32>
    %51 = vector.shape_cast %50 : vector<8xi32> to vector<8x1xi32>
    %52 = vector.broadcast %51 : vector<8x1xi32> to vector<8x16xi32>
    %53 = arith.cmpi eq, %49, %52 : vector<8x16xi32>
    %54 = vector.broadcast %c-2147483648_i32 : i32 to vector<8x16xi32>
    %55 = arith.select %53, %54, %49 : vector<8x16xi1>, vector<8x16xi32>
    %c2_i32 = arith.constant 2 : i32
    %cst_18 = arith.constant dense<-2147483648> : vector<8xi32>
    %56 = vector.multi_reduction <maxsi>, %55, %cst_18 [1] : vector<8x16xi32> to vector<8xi32>
    %57 = vector.shape_cast %56 : vector<8xi32> to vector<8x1xi32>
    %58 = vector.broadcast %57 : vector<8x1xi32> to vector<8x16xi32>
    %59 = arith.cmpi eq, %55, %58 : vector<8x16xi32>
    %60 = vector.broadcast %c-2147483648_i32 : i32 to vector<8x16xi32>
    %61 = arith.select %59, %60, %55 : vector<8x16xi1>, vector<8x16xi32>
    %c3_i32 = arith.constant 3 : i32
    %cst_19 = arith.constant dense<-2147483648> : vector<8xi32>
    %62 = vector.multi_reduction <maxsi>, %61, %cst_19 [1] : vector<8x16xi32> to vector<8xi32>
    %63 = vector.shape_cast %62 : vector<8xi32> to vector<8x1xi32>
    %64 = vector.broadcast %63 : vector<8x1xi32> to vector<8x16xi32>
    %65 = arith.cmpi eq, %61, %64 : vector<8x16xi32>
    %66 = vector.broadcast %c-2147483648_i32 : i32 to vector<8x16xi32>
    %67 = arith.select %65, %66, %61 : vector<8x16xi1>, vector<8x16xi32>
    %68 = vector.broadcast %63 : vector<8x1xi32> to vector<8x16xi32>
    %69 = arith.cmpi sge, %42, %68 : vector<8x16xi32>
    %70 = arith.ori %24, %69 : vector<8x16xi1>
    %cst_20 = arith.constant 1.000000e+00 : f32
    %cst_21 = arith.constant 0.000000e+00 : f32
    %71 = vector.broadcast %cst_20 : f32 to vector<8x16xf32>
    %72 = vector.broadcast %cst_21 : f32 to vector<8x16xf32>
    %73 = arith.select %24, %71, %72 : vector<8x16xi1>, vector<8x16xf32>
    %cst_22 = arith.constant dense<0.000000e+00> : vector<8xf32>
    %74 = vector.multi_reduction <add>, %73, %cst_22 [1] : vector<8x16xf32> to vector<8xf32>
    %75 = vector.shape_cast %74 : vector<8xf32> to vector<8x1xf32>
    %cst_23 = arith.constant -3.000000e+38 : f32
    %76 = vector.broadcast %cst_23 : f32 to vector<8x16xf32>
    %77 = arith.select %70, %13, %76 : vector<8x16xi1>, vector<8x16xf32>
    %cst_24 = arith.constant dense<0xFF800000> : vector<8xf32>
    %78 = vector.multi_reduction <maximumf>, %77, %cst_24 [1] : vector<8x16xf32> to vector<8xf32>
    %79 = vector.shape_cast %78 : vector<8xf32> to vector<8x1xf32>
    %80 = vector.broadcast %79 : vector<8x1xf32> to vector<8x16xf32>
    %81 = arith.subf %13, %80 : vector<8x16xf32>
    %82 = math.exp %81 : vector<8x16xf32>
    %cst_25 = arith.constant 0.000000e+00 : f32
    %83 = vector.broadcast %cst_25 : f32 to vector<8x16xf32>
    %84 = arith.select %24, %82, %83 : vector<8x16xi1>, vector<8x16xf32>
    %cst_26 = arith.constant 0.000000e+00 : f32
    %85 = vector.broadcast %cst_26 : f32 to vector<8x16xf32>
    %86 = arith.select %69, %82, %85 : vector<8x16xi1>, vector<8x16xf32>
    %87 = arith.addf %84, %86 : vector<8x16xf32>
    %cst_27 = arith.constant dense<0.000000e+00> : vector<8xf32>
    %88 = vector.multi_reduction <add>, %87, %cst_27 [1] : vector<8x16xf32> to vector<8xf32>
    %89 = vector.shape_cast %88 : vector<8xf32> to vector<8x1xf32>
    %90 = math.log %89 : vector<8x1xf32>
    %91 = arith.addf %79, %90 : vector<8x1xf32>
    %cst_28 = arith.constant 0.000000e+00 : f32
    %92 = vector.broadcast %cst_28 : f32 to vector<8x16xf32>
    %93 = arith.select %24, %13, %92 : vector<8x16xi1>, vector<8x16xf32>
    %cst_29 = arith.constant dense<0.000000e+00> : vector<8xf32>
    %94 = vector.multi_reduction <add>, %93, %cst_29 [1] : vector<8x16xf32> to vector<8xf32>
    %95 = vector.shape_cast %94 : vector<8xf32> to vector<8x1xf32>
    %96 = tpu.iota {dimensions = array<i32: 0>} : vector<8x1xi32>
    %c8_i32 = arith.constant 8 : i32
    %97 = arith.muli %arg0, %c8_i32 : i32
    %98 = vector.broadcast %97 : i32 to vector<8x1xi32>
    %99 = arith.addi %96, %98 : vector<8x1xi32>
    %cst_30 = arith.constant 0.000000e+00 : f32
    %100 = vector.broadcast %cst_30 : f32 to vector<8x1xf32>
    %101 = arith.cmpf ogt, %75, %100 : vector<8x1xf32>
    %c20_i32 = arith.constant 20 : i32
    %102 = vector.broadcast %c20_i32 : i32 to vector<8x1xi32>
    %103 = arith.cmpi slt, %99, %102 : vector<8x1xi32>
    %104 = arith.andi %101, %103 : vector<8x1xi1>
    %cst_31 = arith.constant 1.000000e+00 : f32
    %105 = vector.broadcast %cst_31 : f32 to vector<8x1xf32>
    %106 = arith.maximumf %75, %105 : vector<8x1xf32>
    %107 = arith.divf %95, %106 : vector<8x1xf32>
    %108 = arith.subf %91, %107 : vector<8x1xf32>
    %cst_32 = arith.constant 0.000000e+00 : f32
    %109 = vector.broadcast %cst_32 : f32 to vector<8x1xf32>
    %110 = arith.select %104, %108, %109 : vector<8x1xi1>, vector<8x1xf32>
    %cst_33 = arith.constant dense<0.000000e+00> : vector<1xf32>
    %111 = vector.multi_reduction <add>, %110, %cst_33 [0] : vector<8x1xf32> to vector<1xf32>
    %112 = vector.shape_cast %111 : vector<1xf32> to vector<1x1xf32>
    %113 = vector.shape_cast %112 : vector<1x1xf32> to vector<1x1x1xf32>
    %114 = vector.shape_cast %113 : vector<1x1x1xf32> to vector<1x1x1xf32>
    %115 = vector.broadcast %114 : vector<1x1x1xf32> to vector<1x8x128xf32>
    %c0_34 = arith.constant 0 : index
    %c0_35 = arith.constant 0 : index
    %c0_36 = arith.constant 0 : index
    %116 = vector.load %arg5[%c0_34, %c0_35, %c0_36] : memref<1x8x128xf32, #tpu.memory_space<vmem>>, vector<1x8x128xf32>
    tpu.vector_store %arg5[%c0_34, %c0_35, %c0_36], %115 {strides = array<i32>} : memref<1x8x128xf32, #tpu.memory_space<vmem>>, vector<1x8x128xf32>,
    return
  }
  func.func @transform_0(%arg0: i32) -> (i32, i32) {
    %c0_i32 = arith.constant 0 : i32
    %c0_i32_0 = arith.constant 0 : i32
    return %arg0, %c0_i32 : i32, i32
  }
  func.func @transform_1(%arg0: i32) -> (i32, i32) {
    %c0_i32 = arith.constant 0 : i32
    %c0_i32_0 = arith.constant 0 : i32
    %c0_i32_1 = arith.constant 0 : i32
    return %c0_i32, %c0_i32_0 : i32, i32
  }
  func.func @transform_2(%arg0: i32) -> (i32, i32) {
    %c0_i32 = arith.constant 0 : i32
    %c0_i32_0 = arith.constant 0 : i32
    %c0_i32_1 = arith.constant 0 : i32
    return %c0_i32, %c0_i32_0 : i32, i32
  }
  func.func @transform_3(%arg0: i32) -> (i32, i32) {
    %c0_i32 = arith.constant 0 : i32
    %c0_i32_0 = arith.constant 0 : i32
    return %arg0, %c0_i32 : i32, i32
  }
  func.func @transform_4(%arg0: i32) -> (i32, i32, i32) {
    %c0_i32 = arith.constant 0 : i32
    %c0_i32_0 = arith.constant 0 : i32
    %c0_i32_1 = arith.constant 0 : i32
    return %arg0, %c0_i32, %c0_i32_0 : i32, i32, i32
  }
}

</mosaic_0001>

<bundles_post_ra>
// kernel: tpu_custom_call.1
= control target key start
LH: loop header
LB: loop body
LE: loop exit
PB: predicated region body
PF: predicated region fallthrough
CT: control target
= control target key end

     0   :  { %9 = vsyncpa [#allocation3], 0  ;;  %s843_s0 = inlined_call_operand.vmem [shape: f32[20,32], index: 0, kind: input, shape index: {}]   ;;  %s844_s1 = inlined_call_operand.vmem [shape: bf16[32,16], index: 1, kind: input, shape index: {}]   ;;  %s845_s2 = inlined_call_operand.vmem [shape: s32[2,16], index: 2, kind: input, shape index: {}]   ;;  %s846_s3 = inlined_call_operand.vmem [shape: s32[20,2], index: 3, kind: input, shape index: {}]   ;;  %s847_s4 = inlined_call_operand.hbm [shape: f32[3,8,128], index: 4, kind: output, shape index: {}]  }
   0x1   :  { %11 = vsyncpa [#allocation3 + $0x1], 0  ;;  %s687_s15 = smov 0   ;;  %s689_s16 = smov 0  }
   0x2   :  { %s691_s17 = smov 0   ;;  %s693_s18 = smov 0  }
   0x3 LB: > { %s708_s19 = sadd.s32 4294967295, %s655_s18   ;;  %s511_s20 = sadd.s32 4294967294, %s655_s18   ;;  %s655_s18 = sphi %s693_s18, %s855_s18   ;;  %s651_s17 = sphi %s691_s17, %s854_s17   ;;  %s647_s16 = sphi %s689_s16, %s853_s16   ;;  %s643_s15 = sphi %s687_s15, %s852_s15  }
   0x4   : > { %s712_s21 = sadd.s32 1, %s655_s18   ;;  %s118_s22 = sadd.s32 1, %s651_s17 }
   0x5   : > { %s115_s23 = ssub.s32 %s655_s18, %s712_s21  ;;  %p128_p0 = scmp.ne.s32.totalorder %s651_s17, %s647_s16 }
   0x6   : > { %p116_p1 = scmp.eq.s32.totalorder %s115_s23, 0  ;;  %p129_p2 = scmp.eq.s32.totalorder %s708_s19, 2 }
   0x7   : > { %p134_p3 = scmp.ne.s32.totalorder %s647_s16, %s643_s15  ;;  %p135_p4 = scmp.eq.s32.totalorder %s511_s20, 2 }
   0x8   : > { %s723_s24 = scalar_select %p116_p1, %s651_s17, %s118_s22  }
   0x9   : > { %p725_p5 = por %p129_p2, %p128_p0  ;;  %p729_p6 = por %p135_p4, %p134_p3 }
   0xa   : > { %p514_p7 = scmp.ge.s32.totalorder %s655_s18, 1  ;;  %p173_p8 = scmp.lt.s32.totalorder %s655_s18, 4 }
   0xc   : > { %p174_p9 = pnand %p514_p7, %p173_p8 }
   0xd   : > { %p202_p10 = scmp.lt.s32.totalorder (!%p174_p9), %s708_s19, 2  ;;  %s523_s23 = sshll.u32 (!%p174_p9), %s708_s19, 3 }
   0xe   : > { %177 = sbr.rel (%p174_p9) target bundleno = 1893 (0x765), region = 36  ;;  %s525_s29 = sshll.u32 (!%p174_p9), %s708_s19, 7 }
   0xf   : > { %s438_s8 = scalar_lea.hbm (!%p174_p9), %s847_s4, %s525_s29  ;;  %s661_s11 = smov (!%p174_p9), [#allocation2]  }
  0x13   : > { %s203_s27 = scalar_select %p202_p10, %s708_s19, 2  ;;  %vm213_vm0 = vcmask 261120   ;;  %v585_v3 = vld [vmem:[%s844_s1 + $0x8] sm:$0xff]   ;;  %v657_v4 = vmov 0.0   ;;  %v586_v5 = vld [vmem:[%s844_s1] sm:$0xff]   ;;  %vm658_vm1 = vmmov 0   ;;  %v308_v15 = vlaneseq }
  0x14   : > { %531 = vmatprep.subr.bf16.mxu0 %v657_v4  ;;  %535 = vmatprep.mubr.msk.bf16.mxu0 %vm658_vm1, %v657_v4  ;;  %v659_v6 = vmov 0   ;;  %v760_v14 = vld [vmem:[%s845_s2] ss:$0 sm:$0xff]  ;;  %vm313_vm4 = vcmask 130048  }
  0x15   : > { %s516_s28 = sshll.u32 %s203_s27, 3  ;;  %532 = vmatpush3.bf16.msra.mxu0 %v585_v3  ;;  %582 = vset.pattern.permute.xlu0 %v659_v6  ;;  %v309_v19 = vand.u32 127, %v308_v15  ;;  %s199_s27 = sand.u32 1, %s647_s16  }
  0x16   : > { %s205_s5 = scalar_lea.vmem %s843_s0, %s516_s28  ;;  %533 = vmatprep.subr.bf16.mxu0 %v657_v4  ;;  %s209_s12 = scalar_lea.vmem %s846_s3, %s516_s28 }
  0x17   : > { %v211_v0 = vld [vmem:[%s205_s5] sm:$0xff]  ;;  %v311_v24 = vsub.s32 15, %v309_v19  ;;  %s515_s28 = sshll.u32 %s199_s27, 3  ;;  %s427_s9 = scalar_lea.sflag [#allocation3], %s199_s27 }
  0x18   : > { %v212_v1 = vmul.f32 %v211_v0, %v211_v0  ;;  %v753_v7 = vld [vmem:[%s209_s12] sm:$0xff]  ;;  %s201_s30 = scalar_lea.vmem [#allocation2], %s515_s28  ;;  %s599_s12 = sshll.u32 %s661_s11, 4  ;;  %s600_s12 = int_to_ptr.vmem [resolvable:$false] %s599_s12 }
  0x19   : > { %534 = vmatpush3.bf16.msra.mxu0 %v586_v5  ;;  %s440_s5 = sshll.u32 %s201_s30, 4  ;;  %s601_s19 = scalar_lea.vmem %s600_s12, 256  ;;  %s441_s5 = int_to_ptr.vmem [resolvable:$true] %s440_s5 }
  0x1a   : > { %v214_v2 = vsel %vm213_vm0, %v212_v1, 0.0  ;;  %s595_s10 = scalar_lea.vmem %s441_s5, 128  ;;  %p602_p0 = scmp.lt.s32.totalorder %s441_s5, %s600_s12 }
  0x1b   : > { %215 = vadd.xlane.f32.xlu0 %v214_v2  ;;  %p596_p11 = scmp.ne.s32.totalorder %s441_s5, %s595_s10  ;;  %p603_p1 = scmp.lt.s32.totalorder %s601_s19, %s595_s10 }
  0x1d   : > { %p597_p12 = pnand %p596_p11, %p725_p5  ;;  %p604_p2 = por %p603_p1, %p602_p0 }
  0x1f   : > { %p598_p13 = pneg %p597_p12 }
  0x21   : > { %p605_p3 = pnand %p604_p2, %p598_p13 }
  0x31   : > { %285 = vperm.xlu0 %582, %v753_v7  }
  0xa4   : > { %v216_v8 = vpop.xlane.xlu0 %215 }
  0xa5   : > { %v217_v9 = vmax.f32 %v216_v8, 1e-24 }
  0xa7   : > { %587 = vrsqrt.f32 %v217_v9  ;;  %v660_v9 = vmov 1  }
  0xa8   : > { %583 = vset.pattern.permute.xlu1 %v660_v9  ;;  %584 = vset.pattern.permute.xlu0 %v660_v9 }
  0xac   : > { %v762_v16 = vpop.permute.xlu0 %285 }
  0xad   : > { %vm301_vm2 = vcmp.ne.s32.totalorder %v762_v16, %v760_v14  ;;  %vm291_vm12 = vcmp.eq.s32.totalorder %v762_v16, %v760_v14 }
  0xb4   : > { %v588_v10 = vpop.eup %587 }
  0xb5   : > { %v219_v11 = vmul.f32 14.285714, %v588_v10 }
  0xb7   : > { %v220_v12 = vmul.f32 %v219_v11, %v211_v0 }
  0xb9   : > { %v221_v13 = vpack.c.bf16 %v220_v12, %v220_v12 }
  0xbb   : > { %536 = vmatmul.mubr.msk.bf16.vlgmr.msra.gmra.mxu0 %vm213_vm0, %v221_v13 }
 0x17b   : > { %v764_v17 = vpop.f32.mrf.mxu0 }
 0x17c   : > { %v302_v18 = vadd.f32 -9999999.0, %v764_v17 }
 0x17d   : > { %v537_v20 = vpop.f32.mrf.mxu0 }
 0x17e   : > { %v303_v21 = vsel %vm301_vm2, %v764_v17, %v302_v18 }
 0x17f   : > { %vm305_vm3 = vcmp.lt.s32.totalorder %v303_v21, 0  ;;  %v306_v22 = vxor.u32 2147483647, %v303_v21  ;;  %v278_v23 = vpop.f32.mrf.mxu0 }
 0x181   : > { %v307_v25 = vsel %vm305_vm3, %v306_v22, %v303_v21  ;;  %v538_v26 = vpop.f32.mrf.mxu0  ;;  %v522_v22 = vld [vmem:[%s845_s2 + $0x1] ss:$0 sm:$0xff] }
 0x182   : > { %v310_v27 = vand.u32 4294967280, %v307_v25 }
 0x184   : > { %v771_v28 = vor.u32 %v311_v24, %v310_v27 }
 0x186   : > { %v314_v29 = vsel %vm313_vm4, %v771_v28, 2147483648 }
 0x187   : > { %v316_v30 = vshra.s32 %v314_v29, 16  ;;  %v315_v32 = vand.u32 65535, %v314_v29 }
 0x189   : > { %v318_v31 = vcvt.s32.f32 %v316_v30  ;;  %v317_v34 = vcvt.s32.f32 %v315_v32 }
 0x18b   : > { %319 = vmax.xlane.f32.xlu1 %v318_v31 }
 0x214   : > { %v320_v33 = vpop.xlane.xlu1 %319 }
 0x215   : > { %vm321_vm5 = vcmp.eq.f32.partialorder %v318_v31, %v320_v33  ;;  %v326_v36 = vcvt.f32.s32 %v320_v33 }
 0x216   : > { %v322_v35 = vsel %vm321_vm5, %v317_v34, -inf }
 0x217   : > { %323 = vmax.xlane.f32.xlu1 %v322_v35  ;;  %v327_v38 = vshll.u32 %v326_v36, 16 }
 0x2a0   : > { %v324_v37 = vpop.xlane.xlu1 %323 }
 0x2a1   : > { %v325_v39 = vcvt.f32.s32 %v324_v37 }
 0x2a3   : > { %v328_v40 = vadd.s32 %v327_v38, %v325_v39  ;;  %v407_v39 = vshrl.u32 %v308_v15, 7 }
 0x2a5   : > { %vm329_vm6 = vcmp.eq.s32.totalorder %v771_v28, %v328_v40  ;;  %v409_v40 = vstv %s523_s23 }
 0x2a6   : > { %v330_v41 = vsel %vm329_vm6, 2147483648, %v771_v28 }
 0x2a7   : > { %v331_v42 = vsel %vm313_vm4, %v330_v41, 2147483648 }
 0x2a8   : > { %v333_v43 = vshra.s32 %v331_v42, 16  ;;  %v332_v45 = vand.u32 65535, %v331_v42 }
 0x2aa   : > { %v335_v44 = vcvt.s32.f32 %v333_v43  ;;  %v334_v47 = vcvt.s32.f32 %v332_v45 }
 0x2ac   : > { %336 = vmax.xlane.f32.xlu1 %v335_v44 }
 0x335   : > { %v337_v46 = vpop.xlane.xlu1 %336 }
 0x336   : > { %vm338_vm7 = vcmp.eq.f32.partialorder %v335_v44, %v337_v46  ;;  %v343_v49 = vcvt.f32.s32 %v337_v46 }
 0x337   : > { %v339_v48 = vsel %vm338_vm7, %v334_v47, -inf }
 0x338   : > { %340 = vmax.xlane.f32.xlu1 %v339_v48  ;;  %v344_v51 = vshll.u32 %v343_v49, 16 }
 0x3c1   : > { %v341_v50 = vpop.xlane.xlu1 %340 }
 0x3c2   : > { %v342_v52 = vcvt.f32.s32 %v341_v50 }
 0x3c4   : > { %v345_v53 = vadd.s32 %v344_v51, %v342_v52 }
 0x3c6   : > { %vm346_vm8 = vcmp.eq.s32.totalorder %v330_v41, %v345_v53 }
 0x3c7   : > { %v347_v54 = vsel %vm346_vm8, 2147483648, %v330_v41  ;;  %v410_v41 = vadd.s32 %v409_v40, %v407_v39 }
 0x3c8   : > { %v348_v55 = vsel %vm313_vm4, %v347_v54, 2147483648 }
 0x3c9   : > { %v350_v56 = vshra.s32 %v348_v55, 16  ;;  %v349_v58 = vand.u32 65535, %v348_v55  ;;  %vm412_vm1 = vcmp.lt.s32.totalorder %v410_v41, 20 }
 0x3cb   : > { %v352_v57 = vcvt.s32.f32 %v350_v56  ;;  %v351_v60 = vcvt.s32.f32 %v349_v58 }
 0x3cd   : > { %353 = vmax.xlane.f32.xlu1 %v352_v57 }
 0x456   : > { %v354_v59 = vpop.xlane.xlu1 %353 }
 0x457   : > { %vm355_vm9 = vcmp.eq.f32.partialorder %v352_v57, %v354_v59  ;;  %v360_v62 = vcvt.f32.s32 %v354_v59 }
 0x458   : > { %v356_v61 = vsel %vm355_vm9, %v351_v60, -inf }
 0x459   : > { %357 = vmax.xlane.f32.xlu1 %v356_v61  ;;  %v361_v0 = vshll.u32 %v360_v62, 16 }
 0x4e2   : > { %v358_v63 = vpop.xlane.xlu1 %357 }
 0x4e3   : > { %v359_v1 = vcvt.f32.s32 %v358_v63 }
 0x4e5   : > { %v362_v2 = vadd.s32 %v361_v0, %v359_v1 }
 0x4e7   : > { %vm363_vm10 = vcmp.eq.s32.totalorder %v347_v54, %v362_v2 }
 0x4e8   : > { %v364_v3 = vsel %vm363_vm10, 2147483648, %v347_v54 }
 0x4e9   : > { %v365_v5 = vsel %vm313_vm4, %v364_v3, 2147483648 }
 0x4ea   : > { %v367_v6 = vshra.s32 %v365_v5, 16  ;;  %v366_v10 = vand.u32 65535, %v365_v5 }
 0x4ec   : > { %v369_v8 = vcvt.s32.f32 %v367_v6  ;;  %v368_v12 = vcvt.s32.f32 %v366_v10 }
 0x4ee   : > { %370 = vmax.xlane.f32.xlu1 %v369_v8 }
 0x577   : > { %v371_v11 = vpop.xlane.xlu1 %370 }
 0x578   : > { %vm372_vm11 = vcmp.eq.f32.partialorder %v369_v8, %v371_v11  ;;  %v377_v18 = vcvt.f32.s32 %v371_v11 }
 0x579   : > { %v373_v13 = vsel %vm372_vm11, %v368_v12, -inf }
 0x57a   : > { %374 = vmax.xlane.f32.xlu1 %v373_v13  ;;  %v378_v20 = vshll.u32 %v377_v18, 16 }
 0x58b   : > { %293 = vperm.xlu1 %583, %v753_v7  }
 0x603   : > { %v375_v19 = vpop.xlane.xlu1 %374 }
 0x604   : > { %v376_v21 = vcvt.f32.s32 %v375_v19 }
 0x606   : > { %v379_v23 = vadd.s32 %v378_v20, %v376_v21 }
 0x607   : > { %v294_v24 = vpop.permute.xlu1 %293 }
 0x608   : > { %vm299_vm13 = vcmp.ne.s32.totalorder %v294_v24, %v522_v22  ;;  %vm380_vm14 = vcmp.ge.s32.totalorder %v771_v28, %v379_v23 }
 0x609   : > { %vm787_vm15 = vmand %vm291_vm12, %vm299_vm13 }
 0x60a   : > { %v382_v7 = vsel %vm787_vm15, 1.0, %v657_v4  ;;  %vm381_vm0 = vmor %vm787_vm15, %vm380_vm14  ;;  %v402_v34 = vsel %vm787_vm15, %v764_v17, 0.0 }
 0x60b   : > { %v383_v26 = vsel %vm313_vm4, %v382_v7, 0.0  ;;  %v386_v27 = vsel %vm381_vm0, %v764_v17, -3e+38  ;;  %v403_v35 = vsel %vm313_vm4, %v402_v34, 0.0 }
 0x60c   : > { %384 = vadd.xlane.f32.xlu1 %v383_v26  ;;  %v387_v14 = vsel %vm313_vm4, %v386_v27, -inf }
 0x60d   : > { %388 = vmax.xlane.f32.xlu0 %v387_v14 }
 0x695   : > { %v385_v36 = vpop.xlane.xlu1 %384 }
 0x696   : > { %v389_v16 = vpop.xlane.xlu0 %388  ;;  %v414_v37 = vmax.f32 %v385_v36, 1.0  ;;  %vm411_vm2 = vcmp.gt.f32.partialorder %v385_v36, 0.0 }
 0x697   : > { %v390_v28 = vsub.f32 %v764_v17, %v389_v16  ;;  %vm413_vm3 = vmand %vm411_vm2, %vm412_vm1 }
 0x699   : > { %v391_v29 = vmul.f32 1.442695, %v390_v28 }
 0x69b   : > { %589 = vpow2.f32 %v391_v29 }
 0x6a8   : > { %v590_v30 = vpop.eup %589 }
 0x6a9   : > { %v393_v4 = vsel %vm787_vm15, %v590_v30, 0.0  ;;  %v394_v31 = vsel %vm380_vm14, %v590_v30, 0.0 }
 0x6aa   : > { %v395_v32 = vadd.f32 %v394_v31, %v393_v4 }
 0x6ac   : > { %v396_v33 = vsel %vm313_vm4, %v395_v32, 0.0 }
 0x6ad   : > { %397 = vadd.xlane.f32.xlu0 %v396_v33 }
 0x6b1   : > { %404 = vadd.xlane.f32.xlu0 %v403_v35 }
 0x736   : > { %v398_v38 = vpop.xlane.xlu0 %397 }
 0x737   : > { %591 = vlog2.f32 %v398_v38 }
 0x738   : > { %593 = vrcp.f32 %v414_v37 }
 0x73a   : > { %v405_v43 = vpop.xlane.xlu0 %404 }
 0x744   : > { %v592_v42 = vpop.eup %591 }
 0x745   : > { %v400_v44 = vmul.f32 0.6931472, %v592_v42  ;;  %v594_v45 = vpop.eup %593 }
 0x746   : > { %v416_v46 = vmul.f32 %v594_v45, %v405_v43 }
 0x747   : > { %v401_v17 = vadd.f32 %v400_v44, %v389_v16 }
 0x749   : > { %v417_v47 = vsub.f32 %v401_v17, %v416_v46 }
 0x74b   : > { %v418_v48 = vsel %vm413_vm3, %v417_v47, 0.0 }
 0x74c   : > { %v419_v49 = vrot.slane %v418_v48, 4 }
 0x74e   : > { %v420_v50 = vadd.f32 %v419_v49, %v418_v48 }
 0x750   : > { %v421_v15 = vrot.slane %v420_v50, 2 }
 0x752   : > { %v422_v51 = vadd.f32 %v421_v15, %v420_v50 }
 0x754   : > { %v423_v52 = vrot.slane %v422_v51, 1 }
 0x756   : > { %v424_v53 = vadd.f32 %v423_v52, %v422_v51 }
 0x758   : > { %425 = vst [vmem:[%s201_s30] sm:$0xff] %v424_v53 }
 0x759   : > { %608 = shalt.err (!%p605_p3)
}
 0x75a   : > { %s609_s13 = scalar_lea.hbm %s438_s8, 128  ;;  %s613_s22 = scalar_lea.hbm %s847_s4, 384 }
 0x75b   : > { %p610_p4 = scmp.ne.s32.totalorder %s438_s8, %s609_s13  ;;  %p614_p9 = scmp.lt.s32.totalorder %s438_s8, %s847_s4 }
 0x75c   : > { %p615_p10 = scmp.lt.s32.totalorder %s613_s22, %s609_s13 }
 0x75d   : > { %p611_p7 = pnand %p610_p4, %p725_p5 }
 0x75e   : > { %p616_p11 = por %p615_p10, %p614_p9 }
 0x75f   : > { %p612_p8 = pneg %p611_p7 }
 0x761   : > { %p617_p12 = pnand %p616_p11, %p612_p8 }
 0x763   : > { %620 = shalt.err (!%p617_p12)
}
 0x764   : > { %539 = dma.vmem_to_hbm [thread:$0]  (%p725_p5), %s441_s5, 128, %s438_s8, %s427_s9  }
 0x765 PF: > { %p545_p13 = scmp.ge.s32.totalorder %s655_s18, 2  ;;  %s452_s28 = sand.u32 1, %s643_s15  }
 0x766   : > { %s453_s29 = scalar_lea.sflag [#allocation3], %s452_s28 }
 0x767   : > { %p542_p0 = pnand %p545_p13, %p729_p6 }
 0x769   : > { %p543_p1 = pneg %p542_p0 }
 0x76b   : > { %638 = dma.done.wait (%p543_p1), %s453_s29, 128  }
 0x76c   : > { %640 = vsyncadd (%p543_p1), %s453_s29, 4294967168  ;;  %p14_p2 = scmp.ge.s32.totalorder %s712_s21, 5   ;;  %s852_s15 = smov %s647_s16 }
 0x76d   : > { %s853_s16 = smov %s651_s17  ;;  %s854_s17 = smov %s723_s24 }
 0x76e   : > { %s855_s18 = smov %s712_s21  ;;  %16 = sbr.rel (!%p14_p2) target bundleno = 3 (0x3), region = 74 }
 0x773   :  { %458 = vsyncpa [#allocation3], 1 }
 0x774   :  { %460 = vsyncpa [#allocation3 + $0x1], 1 }

// kernel: tpu_custom_call.1
= control target key start
LH: loop header
LB: loop body
LE: loop exit
PB: predicated region body
PF: predicated region fallthrough
CT: control target
= control target key end

     0   :  { %9 = vsyncpa [#allocation3], 0  ;;  %s843_s0 = inlined_call_operand.vmem [shape: f32[20,32], index: 0, kind: input, shape index: {}]   ;;  %s844_s1 = inlined_call_operand.vmem [shape: bf16[32,16], index: 1, kind: input, shape index: {}]   ;;  %s845_s2 = inlined_call_operand.vmem [shape: s32[2,16], index: 2, kind: input, shape index: {}]   ;;  %s846_s3 = inlined_call_operand.vmem [shape: s32[20,2], index: 3, kind: input, shape index: {}]   ;;  %s847_s4 = inlined_call_operand.hbm [shape: f32[3,8,128], index: 4, kind: output, shape index: {}]  }
   0x1   :  { %11 = vsyncpa [#allocation3 + $0x1], 0  ;;  %s687_s15 = smov 0   ;;  %s689_s16 = smov 0  }
   0x2   :  { %s691_s17 = smov 0   ;;  %s693_s18 = smov 0  }
   0x3 LB: > { %s708_s19 = sadd.s32 4294967295, %s655_s18   ;;  %s511_s20 = sadd.s32 4294967294, %s655_s18   ;;  %s655_s18 = sphi %s693_s18, %s855_s18   ;;  %s651_s17 = sphi %s691_s17, %s854_s17   ;;  %s647_s16 = sphi %s689_s16, %s853_s16   ;;  %s643_s15 = sphi %s687_s15, %s852_s15  }
   0x4   : > { %s712_s21 = sadd.s32 1, %s655_s18   ;;  %s118_s22 = sadd.s32 1, %s651_s17 }
   0x5   : > { %s115_s23 = ssub.s32 %s655_s18, %s712_s21  ;;  %p128_p0 = scmp.ne.s32.totalorder %s651_s17, %s647_s16 }
   0x6   : > { %p116_p1 = scmp.eq.s32.totalorder %s115_s23, 0  ;;  %p129_p2 = scmp.eq.s32.totalorder %s708_s19, 2 }
   0x7   : > { %p134_p3 = scmp.ne.s32.totalorder %s647_s16, %s643_s15  ;;  %p135_p4 = scmp.eq.s32.totalorder %s511_s20, 2 }
   0x8   : > { %s723_s24 = scalar_select %p116_p1, %s651_s17, %s118_s22  }
   0x9   : > { %p725_p5 = por %p129_p2, %p128_p0  ;;  %p729_p6 = por %p135_p4, %p134_p3 }
   0xa   : > { %p514_p7 = scmp.ge.s32.totalorder %s655_s18, 1  ;;  %p173_p8 = scmp.lt.s32.totalorder %s655_s18, 4 }
   0xc   : > { %p174_p9 = pnand %p514_p7, %p173_p8 }
   0xd   : > { %p202_p10 = scmp.lt.s32.totalorder (!%p174_p9), %s708_s19, 2  ;;  %s523_s23 = sshll.u32 (!%p174_p9), %s708_s19, 3 }
   0xe   : > { %177 = sbr.rel (%p174_p9) target bundleno = 1893 (0x765), region = 36  ;;  %s525_s29 = sshll.u32 (!%p174_p9), %s708_s19, 7 }
   0xf   : > { %s438_s8 = scalar_lea.hbm (!%p174_p9), %s847_s4, %s525_s29  ;;  %s661_s11 = smov (!%p174_p9), [#allocation2]  }
  0x13   : > { %s203_s27 = scalar_select %p202_p10, %s708_s19, 2  ;;  %vm213_vm0 = vcmask 261120   ;;  %v585_v3 = vld [vmem:[%s844_s1 + $0x8] sm:$0xff]   ;;  %v657_v4 = vmov 0.0   ;;  %v586_v5 = vld [vmem:[%s844_s1] sm:$0xff]   ;;  %vm658_vm1 = vmmov 0   ;;  %v308_v15 = vlaneseq }
  0x14   : > { %531 = vmatprep.subr.bf16.mxu0 %v657_v4  ;;  %535 = vmatprep.mubr.msk.bf16.mxu0 %vm658_vm1, %v657_v4  ;;  %v659_v6 = vmov 0   ;;  %v760_v14 = vld [vmem:[%s845_s2] ss:$0 sm:$0xff]  ;;  %vm313_vm4 = vcmask 130048  }
  0x15   : > { %s516_s28 = sshll.u32 %s203_s27, 3  ;;  %532 = vmatpush3.bf16.msra.mxu0 %v585_v3  ;;  %582 = vset.pattern.permute.xlu0 %v659_v6  ;;  %v309_v19 = vand.u32 127, %v308_v15  ;;  %s199_s27 = sand.u32 1, %s647_s16  }
  0x16   : > { %s205_s5 = scalar_lea.vmem %s843_s0, %s516_s28  ;;  %533 = vmatprep.subr.bf16.mxu0 %v657_v4  ;;  %s209_s12 = scalar_lea.vmem %s846_s3, %s516_s28 }
  0x17   : > { %v211_v0 = vld [vmem:[%s205_s5] sm:$0xff]  ;;  %v311_v24 = vsub.s32 15, %v309_v19  ;;  %s515_s28 = sshll.u32 %s199_s27, 3  ;;  %s427_s9 = scalar_lea.sflag [#allocation3], %s199_s27 }
  0x18   : > { %v212_v1 = vmul.f32 %v211_v0, %v211_v0  ;;  %v753_v7 = vld [vmem:[%s209_s12] sm:$0xff]  ;;  %s201_s30 = scalar_lea.vmem [#allocation2], %s515_s28  ;;  %s599_s12 = sshll.u32 %s661_s11, 4  ;;  %s600_s12 = int_to_ptr.vmem [resolvable:$false] %s599_s12 }
  0x19   : > { %534 = vmatpush3.bf16.msra.mxu0 %v586_v5  ;;  %s440_s5 = sshll.u32 %s201_s30, 4  ;;  %s601_s19 = scalar_lea.vmem %s600_s12, 256  ;;  %s441_s5 = int_to_ptr.vmem [resolvable:$true] %s440_s5 }
  0x1a   : > { %v214_v2 = vsel %vm213_vm0, %v212_v1, 0.0  ;;  %s595_s10 = scalar_lea.vmem %s441_s5, 128  ;;  %p602_p0 = scmp.lt.s32.totalorder %s441_s5, %s600_s12 }
  0x1b   : > { %215 = vadd.xlane.f32.xlu0 %v214_v2  ;;  %p596_p11 = scmp.ne.s32.totalorder %s441_s5, %s595_s10  ;;  %p603_p1 = scmp.lt.s32.totalorder %s601_s19, %s595_s10 }
  0x1d   : > { %p597_p12 = pnand %p596_p11, %p725_p5  ;;  %p604_p2 = por %p603_p1, %p602_p0 }
  0x1f   : > { %p598_p13 = pneg %p597_p12 }
  0x21   : > { %p605_p3 = pnand %p604_p2, %p598_p13 }
  0x31   : > { %285 = vperm.xlu0 %582, %v753_v7  }
  0xa4   : > { %v216_v8 = vpop.xlane.xlu0 %215 }
  0xa5   : > { %v217_v9 = vmax.f32 %v216_v8, 1e-24 }
  0xa7   : > { %587 = vrsqrt.f32 %v217_v9  ;;  %v660_v9 = vmov 1  }
  0xa8   : > { %583 = vset.pattern.permute.xlu1 %v660_v9  ;;  %584 = vset.pattern.permute.xlu0 %v660_v9 }
  0xac   : > { %v762_v16 = vpop.permute.xlu0 %285 }
  0xad   : > { %vm301_vm2 = vcmp.ne.s32.totalorder %v762_v16, %v760_v14  ;;  %vm291_vm12 = vcmp.eq.s32.totalorder %v762_v16, %v760_v14 }
  0xb4   : > { %v588_v10 = vpop.eup %587 }
  0xb5   : > { %v219_v11 = vmul.f32 14.285714, %v588_v10 }
  0xb7   : > { %v220_v12 = vmul.f32 %v219_v11, %v211_v0 }
  0xb9   : > { %v221_v13 = vpack.c.bf16 %v220_v12, %v220_v12 }
  0xbb   : > { %536 = vmatmul.mubr.msk.bf16.vlgmr.msra.gmra.mxu0 %vm213_vm0, %v221_v13 }
 0x17b   : > { %v764_v17 = vpop.f32.mrf.mxu0 }
 0x17c   : > { %v302_v18 = vadd.f32 -9999999.0, %v764_v17 }
 0x17d   : > { %v537_v20 = vpop.f32.mrf.mxu0 }
 0x17e   : > { %v303_v21 = vsel %vm301_vm2, %v764_v17, %v302_v18 }
 0x17f   : > { %vm305_vm3 = vcmp.lt.s32.totalorder %v303_v21, 0  ;;  %v306_v22 = vxor.u32 2147483647, %v303_v21  ;;  %v278_v23 = vpop.f32.mrf.mxu0 }
 0x181   : > { %v307_v25 = vsel %vm305_vm3, %v306_v22, %v303_v21  ;;  %v538_v26 = vpop.f32.mrf.mxu0  ;;  %v522_v22 = vld [vmem:[%s845_s2 + $0x1] ss:$0 sm:$0xff] }
 0x182   : > { %v310_v27 = vand.u32 4294967280, %v307_v25 }
 0x184   : > { %v771_v28 = vor.u32 %v311_v24, %v310_v27 }
 0x186   : > { %v314_v29 = vsel %vm313_vm4, %v771_v28, 2147483648 }
 0x187   : > { %v316_v30 = vshra.s32 %v314_v29, 16  ;;  %v315_v32 = vand.u32 65535, %v314_v29 }
 0x189   : > { %v318_v31 = vcvt.s32.f32 %v316_v30  ;;  %v317_v34 = vcvt.s32.f32 %v315_v32 }
 0x18b   : > { %319 = vmax.xlane.f32.xlu1 %v318_v31 }
 0x214   : > { %v320_v33 = vpop.xlane.xlu1 %319 }
 0x215   : > { %vm321_vm5 = vcmp.eq.f32.partialorder %v318_v31, %v320_v33  ;;  %v326_v36 = vcvt.f32.s32 %v320_v33 }
 0x216   : > { %v322_v35 = vsel %vm321_vm5, %v317_v34, -inf }
 0x217   : > { %323 = vmax.xlane.f32.xlu1 %v322_v35  ;;  %v327_v38 = vshll.u32 %v326_v36, 16 }
 0x2a0   : > { %v324_v37 = vpop.xlane.xlu1 %323 }
 0x2a1   : > { %v325_v39 = vcvt.f32.s32 %v324_v37 }
 0x2a3   : > { %v328_v40 = vadd.s32 %v327_v38, %v325_v39  ;;  %v407_v39 = vshrl.u32 %v308_v15, 7 }
 0x2a5   : > { %vm329_vm6 = vcmp.eq.s32.totalorder %v771_v28, %v328_v40  ;;  %v409_v40 = vstv %s523_s23 }
 0x2a6   : > { %v330_v41 = vsel %vm329_vm6, 2147483648, %v771_v28 }
 0x2a7   : > { %v331_v42 = vsel %vm313_vm4, %v330_v41, 2147483648 }
 0x2a8   : > { %v333_v43 = vshra.s32 %v331_v42, 16  ;;  %v332_v45 = vand.u32 65535, %v331_v42 }
 0x2aa   : > { %v335_v44 = vcvt.s32.f32 %v333_v43  ;;  %v334_v47 = vcvt.s32.f32 %v332_v45 }
 0x2ac   : > { %336 = vmax.xlane.f32.xlu1 %v335_v44 }
 0x335   : > { %v337_v46 = vpop.xlane.xlu1 %336 }
 0x336   : > { %vm338_vm7 = vcmp.eq.f32.partialorder %v335_v44, %v337_v46  ;;  %v343_v49 = vcvt.f32.s32 %v337_v46 }
 0x337   : > { %v339_v48 = vsel %vm338_vm7, %v334_v47, -inf }
 0x338   : > { %340 = vmax.xlane.f32.xlu1 %v339_v48  ;;  %v344_v51 = vshll.u32 %v343_v49, 16 }
 0x3c1   : > { %v341_v50 = vpop.xlane.xlu1 %340 }
 0x3c2   : > { %v342_v52 = vcvt.f32.s32 %v341_v50 }
 0x3c4   : > { %v345_v53 = vadd.s32 %v344_v51, %v342_v52 }
 0x3c6   : > { %vm346_vm8 = vcmp.eq.s32.totalorder %v330_v41, %v345_v53 }
 0x3c7   : > { %v347_v54 = vsel %vm346_vm8, 2147483648, %v330_v41  ;;  %v410_v41 = vadd.s32 %v409_v40, %v407_v39 }
 0x3c8   : > { %v348_v55 = vsel %vm313_vm4, %v347_v54, 2147483648 }
 0x3c9   : > { %v350_v56 = vshra.s32 %v348_v55, 16  ;;  %v349_v58 = vand.u32 65535, %v348_v55  ;;  %vm412_vm1 = vcmp.lt.s32.totalorder %v410_v41, 20 }
 0x3cb   : > { %v352_v57 = vcvt.s32.f32 %v350_v56  ;;  %v351_v60 = vcvt.s32.f32 %v349_v58 }
 0x3cd   : > { %353 = vmax.xlane.f32.xlu1 %v352_v57 }
 0x456   : > { %v354_v59 = vpop.xlane.xlu1 %353 }
 0x457   : > { %vm355_vm9 = vcmp.eq.f32.partialorder %v352_v57, %v354_v59  ;;  %v360_v62 = vcvt.f32.s32 %v354_v59 }
 0x458   : > { %v356_v61 = vsel %vm355_vm9, %v351_v60, -inf }
 0x459   : > { %357 = vmax.xlane.f32.xlu1 %v356_v61  ;;  %v361_v0 = vshll.u32 %v360_v62, 16 }
 0x4e2   : > { %v358_v63 = vpop.xlane.xlu1 %357 }
 0x4e3   : > { %v359_v1 = vcvt.f32.s32 %v358_v63 }
 0x4e5   : > { %v362_v2 = vadd.s32 %v361_v0, %v359_v1 }
 0x4e7   : > { %vm363_vm10 = vcmp.eq.s32.totalorder %v347_v54, %v362_v2 }
 0x4e8   : > { %v364_v3 = vsel %vm363_vm10, 2147483648, %v347_v54 }
 0x4e9   : > { %v365_v5 = vsel %vm313_vm4, %v364_v3, 2147483648 }
 0x4ea   : > { %v367_v6 = vshra.s32 %v365_v5, 16  ;;  %v366_v10 = vand.u32 65535, %v365_v5 }
 0x4ec   : > { %v369_v8 = vcvt.s32.f32 %v367_v6  ;;  %v368_v12 = vcvt.s32.f32 %v366_v10 }
 0x4ee   : > { %370 = vmax.xlane.f32.xlu1 %v369_v8 }
 0x577   : > { %v371_v11 = vpop.xlane.xlu1 %370 }
 0x578   : > { %vm372_vm11 = vcmp.eq.f32.partialorder %v369_v8, %v371_v11  ;;  %v377_v18 = vcvt.f32.s32 %v371_v11 }
 0x579   : > { %v373_v13 = vsel %vm372_vm11, %v368_v12, -inf }
 0x57a   : > { %374 = vmax.xlane.f32.xlu1 %v373_v13  ;;  %v378_v20 = vshll.u32 %v377_v18, 16 }
 0x58b   : > { %293 = vperm.xlu1 %583, %v753_v7  }
 0x603   : > { %v375_v19 = vpop.xlane.xlu1 %374 }
 0x604   : > { %v376_v21 = vcvt.f32.s32 %v375_v19 }
 0x606   : > { %v379_v23 = vadd.s32 %v378_v20, %v376_v21 }
 0x607   : > { %v294_v24 = vpop.permute.xlu1 %293 }
 0x608   : > { %vm299_vm13 = vcmp.ne.s32.totalorder %v294_v24, %v522_v22  ;;  %vm380_vm14 = vcmp.ge.s32.totalorder %v771_v28, %v379_v23 }
 0x609   : > { %vm787_vm15 = vmand %vm291_vm12, %vm299_vm13 }
 0x60a   : > { %v382_v7 = vsel %vm787_vm15, 1.0, %v657_v4  ;;  %vm381_vm0 = vmor %vm787_vm15, %vm380_vm14  ;;  %v402_v34 = vsel %vm787_vm15, %v764_v17, 0.0 }
 0x60b   : > { %v383_v26 = vsel %vm313_vm4, %v382_v7, 0.0  ;;  %v386_v27 = vsel %vm381_vm0, %v764_v17, -3e+38  ;;  %v403_v35 = vsel %vm313_vm4, %v402_v34, 0.0 }
 0x60c   : > { %384 = vadd.xlane.f32.xlu1 %v383_v26  ;;  %v387_v14 = vsel %vm313_vm4, %v386_v27, -inf }
 0x60d   : > { %388 = vmax.xlane.f32.xlu0 %v387_v14 }
 0x695   : > { %v385_v36 = vpop.xlane.xlu1 %384 }
 0x696   : > { %v389_v16 = vpop.xlane.xlu0 %388  ;;  %v414_v37 = vmax.f32 %v385_v36, 1.0  ;;  %vm411_vm2 = vcmp.gt.f32.partialorder %v385_v36, 0.0 }
 0x697   : > { %v390_v28 = vsub.f32 %v764_v17, %v389_v16  ;;  %vm413_vm3 = vmand %vm411_vm2, %vm412_vm1 }
 0x699   : > { %v391_v29 = vmul.f32 1.442695, %v390_v28 }
 0x69b   : > { %589 = vpow2.f32 %v391_v29 }
 0x6a8   : > { %v590_v30 = vpop.eup %589 }
 0x6a9   : > { %v393_v4 = vsel %vm787_vm15, %v590_v30, 0.0  ;;  %v394_v31 = vsel %vm380_vm14, %v590_v30, 0.0 }
 0x6aa   : > { %v395_v32 = vadd.f32 %v394_v31, %v393_v4 }
 0x6ac   : > { %v396_v33 = vsel %vm313_vm4, %v395_v32, 0.0 }
 0x6ad   : > { %397 = vadd.xlane.f32.xlu0 %v396_v33 }
 0x6b1   : > { %404 = vadd.xlane.f32.xlu0 %v403_v35 }
 0x736   : > { %v398_v38 = vpop.xlane.xlu0 %397 }
 0x737   : > { %591 = vlog2.f32 %v398_v38 }
 0x738   : > { %593 = vrcp.f32 %v414_v37 }
 0x73a   : > { %v405_v43 = vpop.xlane.xlu0 %404 }
 0x744   : > { %v592_v42 = vpop.eup %591 }
 0x745   : > { %v400_v44 = vmul.f32 0.6931472, %v592_v42  ;;  %v594_v45 = vpop.eup %593 }
 0x746   : > { %v416_v46 = vmul.f32 %v594_v45, %v405_v43 }
 0x747   : > { %v401_v17 = vadd.f32 %v400_v44, %v389_v16 }
 0x749   : > { %v417_v47 = vsub.f32 %v401_v17, %v416_v46 }
 0x74b   : > { %v418_v48 = vsel %vm413_vm3, %v417_v47, 0.0 }
 0x74c   : > { %v419_v49 = vrot.slane %v418_v48, 4 }
 0x74e   : > { %v420_v50 = vadd.f32 %v419_v49, %v418_v48 }
 0x750   : > { %v421_v15 = vrot.slane %v420_v50, 2 }
 0x752   : > { %v422_v51 = vadd.f32 %v421_v15, %v420_v50 }
 0x754   : > { %v423_v52 = vrot.slane %v422_v51, 1 }
 0x756   : > { %v424_v53 = vadd.f32 %v423_v52, %v422_v51 }
 0x758   : > { %425 = vst [vmem:[%s201_s30] sm:$0xff] %v424_v53 }
 0x759   : > { %608 = shalt.err (!%p605_p3)
}
 0x75a   : > { %s609_s13 = scalar_lea.hbm %s438_s8, 128  ;;  %s613_s22 = scalar_lea.hbm %s847_s4, 384 }
 0x75b   : > { %p610_p4 = scmp.ne.s32.totalorder %s438_s8, %s609_s13  ;;  %p614_p9 = scmp.lt.s32.totalorder %s438_s8, %s847_s4 }
 0x75c   : > { %p615_p10 = scmp.lt.s32.totalorder %s613_s22, %s609_s13 }
 0x75d   : > { %p611_p7 = pnand %p610_p4, %p725_p5 }
 0x75e   : > { %p616_p11 = por %p615_p10, %p614_p9 }
 0x75f   : > { %p612_p8 = pneg %p611_p7 }
 0x761   : > { %p617_p12 = pnand %p616_p11, %p612_p8 }
 0x763   : > { %620 = shalt.err (!%p617_p12)
}
 0x764   : > { %539 = dma.vmem_to_hbm [thread:$0]  (%p725_p5), %s441_s5, 128, %s438_s8, %s427_s9  }
 0x765 PF: > { %p545_p13 = scmp.ge.s32.totalorder %s655_s18, 2  ;;  %s452_s28 = sand.u32 1, %s643_s15  }
 0x766   : > { %s453_s29 = scalar_lea.sflag [#allocation3], %s452_s28 }
 0x767   : > { %p542_p0 = pnand %p545_p13, %p729_p6 }
 0x769   : > { %p543_p1 = pneg %p542_p0 }
 0x76b   : > { %638 = dma.done.wait (%p543_p1), %s453_s29, 128  }
 0x76c   : > { %640 = vsyncadd (%p543_p1), %s453_s29, 4294967168  ;;  %p14_p2 = scmp.ge.s32.totalorder %s712_s21, 5   ;;  %s852_s15 = smov %s647_s16 }
 0x76d   : > { %s853_s16 = smov %s651_s17  ;;  %s854_s17 = smov %s723_s24 }
 0x76e   : > { %s855_s18 = smov %s712_s21  ;;  %16 = sbr.rel (!%p14_p2) target bundleno = 3 (0x3), region = 74 }
 0x773   :  { %458 = vsyncpa [#allocation3], 1 }
 0x774   :  { %460 = vsyncpa [#allocation3 + $0x1], 1 }

</bundles_post_ra>
